<compile_context>
chip_gen: v7x
topology: tpu7x:2x2x1
jax: 0.10.0
libtpu: 0.0.40
codegen_flags: <defaults>
</compile_context>

<pallas_src>
import functools

import jax
import jax.numpy as jnp
from jax.experimental import pallas as pl
from jax.experimental.pallas import tpu as pltpu


# ----------------------------------------------------------------------------
# Fused TCN-block kernel (one grid step == one batch element)
# ----------------------------------------------------------------------------
def _tcn_block_kernel(x_ref, bias1_ref, w1_ref, pp_ref, w2_ref, alpha_ref,
                      o_ref, *, dilation, t_real, eps):
    x = x_ref[0]                              # (C, Tp) f32
    w1 = w1_ref[...]                          # (TH, C) compute dtype
    w2 = w2_ref[...]                          # (C, TH) compute dtype
    th = w1.shape[0]
    c_out = w2.shape[0]
    tp = x.shape[1]
    d = dilation
    inv_n = 1.0 / float(th * t_real)
    cdt = w1.dtype

    # packed per-channel params: one DMA, sliced with static offsets in-kernel
    pp = pp_ref[...]                          # (R, 9) f32
    g1s = pp[:th, 0:1]
    g1b = pp[:th, 1:2]
    w_l = pp[:th, 2:3]                        # depthwise tap h[t-d]
    w_c = pp[:th, 3:4]                        # depthwise tap h[t]
    w_r = pp[:th, 4:5]                        # depthwise tap h[t+d]
    dwb = pp[:th, 5:6]
    g2s = pp[:th, 6:7]
    g2b = pp[:th, 7:8]
    b2 = pp[:c_out, 8:9]

    # valid-lane mask for the real (un-padded) time extent — computed once
    ids = jax.lax.broadcasted_iota(jnp.int32, (1, tp), 1)
    valid = ids < t_real                      # bool (1, tp)
    mask = valid.astype(jnp.float32)          # f32  (1, tp)

    # ---- first 1x1 conv (speaker-emb already folded into bias1) ------------
    h = jnp.dot(w1, x.astype(cdt), preferred_element_type=jnp.float32)
    h = h + bias1_ref[0]                      # (TH, Tp) + (TH, 1)

    # ---- PReLU 1 (scalar alpha from SMEM) -----------------------------------
    a1 = alpha_ref[0]
    h = jnp.where(h > 0, h, a1 * h)

    # ---- GlobalNorm 1: single masked pass (Σx, Σx²), folded FMA -------------
    hm = h * mask
    s1 = jnp.sum(hm)
    s2 = jnp.sum(hm * hm)
    mean1 = s1 * inv_n
    var1 = jnp.maximum(s2 * inv_n - mean1 * mean1, 0.0)
    scale1 = g1s * jax.lax.rsqrt(var1 + eps)  # (TH,1)
    shift1 = g1b - mean1 * scale1             # (TH,1)
    # padded lanes zeroed => implicit zero-padding for the depthwise conv
    h = (h * scale1 + shift1) * mask

    # ---- depthwise dilated conv, k=3, padding=dilation ('same'), via XLU ----
    g = h * w_c + dwb
    if d < tp:
        left = pltpu.roll(h, d, 1)            # left[t]  = h[(t-d) mod tp]
        right = pltpu.roll(h, tp - d, 1)      # right[t] = h[(t+d) mod tp]
        if d > tp - t_real:
            # roll wrap-around can reach valid lanes -> mask it out
            left = jnp.where(ids >= d, left, 0.0)
            right = jnp.where(ids < tp - d, right, 0.0)
        # else: wrapped values land on / come from zeroed padded lanes only
        g = g + left * w_l
        g = g + right * w_r

    # ---- PReLU 2 ------------------------------------------------------------
    a2 = alpha_ref[1]
    g = jnp.where(g > 0, g, a2 * g)

    # ---- GlobalNorm 2: single masked pass, folded FMA ------------------------
    gm = g * mask
    s1 = jnp.sum(gm)
    s2 = jnp.sum(gm * gm)
    mean2 = s1 * inv_n
    var2 = jnp.maximum(s2 * inv_n - mean2 * mean2, 0.0)
    scale2 = g2s * jax.lax.rsqrt(var2 + eps)
    shift2 = g2b - mean2 * scale2
    g = g * scale2 + shift2

    # ---- last 1x1 conv + residual add; padded lanes zeroed on the store -----
    out = jnp.dot(w2, g.astype(cdt), preferred_element_type=jnp.float32)
    out = out + b2
    o_ref[0] = jnp.where(valid, x + out, 0.0).astype(o_ref.dtype)


def tcn_block(x, p, dilation, speaker_emb=None, eps=1e-6, *,
              t_real=None, keep_padded=False, compute_dtype=jnp.bfloat16):
    """Fused TCNBlock forward.

    x: [B, TC, T] float32 (or already padded to a multiple of 128 — pass
    `t_real` in that case).  speaker_emb: [B, E] or None.
    Returns [B, TC, T] (or the padded [B, TC, Tp] if keep_padded=True; padded
    lanes are guaranteed zero so the result can feed the next block directly).
    """
    x = x.astype(jnp.float32)
    B, C, T_in = x.shape
    TH = p['dw_w'].shape[0]

    if t_real is None:
        # pad time once (wrapper-side) to a multiple of 128 → lane-dense stores
        t_real = T_in
        Tp = max(128, ((T_in + 127) // 128) * 128)
        xpad = x if Tp == T_in else jnp.pad(x, ((0, 0), (0, 0), (0, Tp - T_in)))
    else:
        # caller already padded (stacked-block path)
        Tp = T_in
        assert Tp % 128 == 0 and t_real <= Tp
        xpad = x

    # --- speaker-emb folded into a per-sample bias (tiny XLA matmul) ---------
    b1 = p['b1'].reshape(-1).astype(jnp.float32)
    if speaker_emb is not None:
        bias1 = b1[None, :] + speaker_emb.astype(jnp.float32) @ \
            p['w1e'].astype(jnp.float32).T                       # (B, TH)
    else:
        bias1 = jnp.broadcast_to(b1[None, :], (B, TH))
    bias1 = bias1.reshape(B, TH, 1)

    # --- pack the tiny per-channel params into one (R, 9) array --------------
    R = max(TH, C)

    def col(v):
        v = jnp.asarray(v, jnp.float32).reshape(-1)
        return jnp.pad(v, (0, R - v.shape[0]))[:, None]

    pp = jnp.concatenate([
        col(p['g1s']), col(p['g1b']),
        col(p['dw_w'][:, 0]), col(p['dw_w'][:, 1]), col(p['dw_w'][:, 2]),
        col(p['dw_b']), col(p['g2s']), col(p['g2b']), col(p['b2']),
    ], axis=1)                                                    # (R, 9)

    w1 = p['w1x'].astype(compute_dtype)                           # (TH, C)
    w2 = p['w2'].astype(compute_dtype)                            # (C, TH)
    alphas = jnp.concatenate([p['alpha1'].reshape(-1),
                              p['alpha2'].reshape(-1)]).astype(jnp.float32)

    # --- scoped-VMEM limit sized from the per-step footprint (+headroom) -----
    blk = C * Tp * 4                 # one f32 (C, Tp) block
    inter = TH * Tp * 4              # one f32 (TH, Tp) intermediate
    per_step = 4 * blk + 6 * inter + 2 * TH * C * 4 + 10 * R * 4
    # NOTE: clamp should be ~56 MiB on v7x; the T-tiling TODO is the real fix
    # once TH*Tp no longer fits.
    vmem_limit = int(min(max(2 * per_step, 32 << 20), 100 << 20))

    out = pl.pallas_call(
        functools.partial(_tcn_block_kernel, dilation=int(dilation),
                          t_real=int(t_real), eps=float(eps)),
        out_shape=jax.ShapeDtypeStruct((B, C, Tp), jnp.float32),
        grid=(B,),
        in_specs=[
            pl.BlockSpec((1, C, Tp), lambda b: (b, 0, 0)),      # x (f32)
            pl.BlockSpec((1, TH, 1), lambda b: (b, 0, 0)),      # per-sample bias
            pl.BlockSpec((TH, C), lambda b: (0, 0)),            # w1 (compute dt)
            pl.BlockSpec((R, 9), lambda b: (0, 0)),             # packed params
            pl.BlockSpec((C, TH), lambda b: (0, 0)),            # w2 (compute dt)
            pl.BlockSpec(memory_space=pltpu.MemorySpace.SMEM),  # PReLU alphas
        ],
        out_specs=pl.BlockSpec((1, C, Tp), lambda b: (b, 0, 0)),
        compiler_params=pltpu.CompilerParams(
            dimension_semantics=("parallel",),
            vmem_limit_bytes=vmem_limit),
    )(xpad, bias1, w1, pp, w2, alphas)

    if keep_padded:
        return out
    return out[:, :, :t_real]


# ----------------------------------------------------------------------------
# Pure-JAX reference (mirrors the PyTorch module) for correctness checking
# ----------------------------------------------------------------------------
def _global_norm_ref(x, scale, bias, eps):
    mean = jnp.mean(x, axis=(1, 2), keepdims=True)
    var = jnp.mean((x - mean) ** 2, axis=(1, 2), keepdims=True)
    return (scale[None, :, None] * (x - mean) / jnp.sqrt(var + eps)
            + bias[None, :, None])


def tcn_block_ref(x, p, dilation, speaker_emb=None, eps=1e-6):
    B, C, T = x.shape
    residual = x
    if speaker_emb is not None:
        emb = jnp.broadcast_to(speaker_emb[:, :, None],
                               (B, speaker_emb.shape[1], T))
        xin = jnp.concatenate([emb, x], axis=1)
        w1 = jnp.concatenate([p['w1e'], p['w1x']], axis=1)
    else:
        xin, w1 = x, p['w1x']
    h = jnp.einsum('oc,bct->bot', w1, xin) + p['b1'][None, :, None]
    h = jnp.where(h > 0, h, p['alpha1'][0] * h)
    h = _global_norm_ref(h, p['g1s'], p['g1b'], eps)
    d = int(dilation)
    hp = jnp.pad(h, ((0, 0), (0, 0), (d, d)))
    g = (p['dw_w'][None, :, 0:1] * hp[:, :, 0:T]
         + p['dw_w'][None, :, 1:2] * hp[:, :, d:d + T]
         + p['dw_w'][None, :, 2:3] * hp[:, :, 2 * d:2 * d + T]
         + p['dw_b'][None, :, None])
    g = jnp.where(g > 0, g, p['alpha2'][0] * g)
    g = _global_norm_ref(g, p['g2s'], p['g2b'], eps)
    out = jnp.einsum('oc,bct->bot', p['w2'], g) + p['b2'][None, :, None]
    return residual + out


# ----------------------------------------------------------------------------
# Parameter construction (deterministic, synthetic, PyTorch-layout weights)
# ----------------------------------------------------------------------------
def init_tcn_params(key, tcn_in, tcn_hidden, user_emb_dim=None):
    ks = jax.random.split(key, 12)
    rnd = lambda k, shape, s=0.1: jax.random.normal(k, shape, jnp.float32) * s
    p = {
        'w1x': rnd(ks[0], (tcn_hidden, tcn_in)),
        'b1': rnd(ks[1], (tcn_hidden,)),
        'alpha1': jnp.full((1,), 0.25, jnp.float32),
        'g1s': 1.0 + rnd(ks[2], (tcn_hidden,)),
        'g1b': rnd(ks[3], (tcn_hidden,)),
        'dw_w': rnd(ks[4], (tcn_hidden, 3), 0.3),
        'dw_b': rnd(ks[5], (tcn_hidden,)),
        'alpha2': jnp.full((1,), 0.25, jnp.float32),
        'g2s': 1.0 + rnd(ks[6], (tcn_hidden,)),
        'g2b': rnd(ks[7], (tcn_hidden,)),
        'w2': rnd(ks[8], (tcn_in, tcn_hidden)),
        'b2': rnd(ks[9], (tcn_in,)),
    }
    if user_emb_dim is not None:
        p['w1e'] = rnd(ks[10], (tcn_hidden, user_emb_dim))
    return p


# ----------------------------------------------------------------------------
if __name__ == "__main__":
    B, TC, TH, E = 2, 16, 32, 16

    # (T, dilation, needs_concat); the T=100 case exercises the in-kernel
    # masking of padded time lanes (norm stats + halo); the T=128 cases
    # exercise the masked roll-wrap branch (d > Tp - T).
    configs = [(128, 1, True), (128, 4, False), (100, 2, True)]

    key = jax.random.PRNGKey(0)
    kx, ke, kp = jax.random.split(key, 3)
    for idx, (T, dil, concat) in enumerate(configs):
        kxi = jax.random.fold_in(kx, idx)
        kei = jax.random.fold_in(ke, idx)
        kpi = jax.random.fold_in(kp, idx)
        x = jax.random.normal(kxi, (B, TC, T), jnp.float32)
        emb = jax.random.normal(kei, (B, E), jnp.float32) if concat else None
        params = init_tcn_params(kpi, TC, TH, E if concat else None)

        ref = tcn_block_ref(x, params, dil, emb)

        # all-f32 path: tight tolerance so masking/statistics bugs show up
        out32 = jax.block_until_ready(
            tcn_block(x, params, dil, emb, compute_dtype=jnp.float32))
        assert out32.shape == (B, TC, T)
        err32 = float(jnp.max(jnp.abs(out32 - ref)))
        assert err32 < 2e-4, f"f32 config {idx} (T={T}, d={dil}): err {err32}"

        # bf16 MXU path (perf default): only the two dots run in bf16
        out16 = jax.block_until_ready(tcn_block(x, params, dil, emb))
        err16 = float(jnp.max(jnp.abs(out16 - ref)))
        assert err16 < 3e-2, f"bf16 config {idx} (T={T}, d={dil}): err {err16}"

    # stacked blocks: pad once, keep the padded layout between blocks,
    # slice once at the end (padded lanes stay zero thanks to the masked store)
    T, Tp = 100, 128
    x = jax.random.normal(jax.random.fold_in(kx, 100), (B, TC, T), jnp.float32)
    emb = jax.random.normal(jax.random.fold_in(ke, 100), (B, E), jnp.float32)
    p1 = init_tcn_params(jax.random.fold_in(kp, 100), TC, TH, E)
    p2 = init_tcn_params(jax.random.fold_in(kp, 101), TC, TH, None)
    xp = jnp.pad(x, ((0, 0), (0, 0), (0, Tp - T)))
    y = tcn_block(xp, p1, 1, emb, t_real=T, keep_padded=True,
                  compute_dtype=jnp.float32)
    y = tcn_block(y, p2, 2, None, t_real=T, keep_padded=False,
                  compute_dtype=jnp.float32)
    y = jax.block_until_ready(y)
    ref2 = tcn_block_ref(tcn_block_ref(x, p1, 1, emb), p2, 2, None)
    err = float(jnp.max(jnp.abs(y - ref2)))
    assert err < 5e-4, f"stacked blocks: max abs err {err}"

    print("KERNEL_OK")
</pallas_src>

<mosaic_0001>
module attributes {stable_mosaic.version = 11 : i64} {
  func.func @_tcn_block_kernel(%arg0: i32, %arg1: memref<1x16x128xf32, #tpu.memory_space<vmem>>, %arg2: memref<1x32x1xf32, #tpu.memory_space<vmem>>, %arg3: memref<32x16xf32, #tpu.memory_space<vmem>>, %arg4: memref<32x9xf32, #tpu.memory_space<vmem>>, %arg5: memref<16x32xf32, #tpu.memory_space<vmem>>, %arg6: memref<2xf32, #tpu.memory_space<smem>>, %arg7: memref<1x16x128xf32, #tpu.memory_space<vmem>>) attributes {dimension_semantics = [#tpu.dimension_semantics<parallel>], iteration_bounds = array<i64: 2>, scalar_prefetch = 0 : i64, scratch_operands = 0 : i64, tpu.core_type = #tpu.core_type<tc>, window_params = [{transform_indices = @transform_0, window_bounds = array<i64: 1, 16, 128>}, {transform_indices = @transform_1, window_bounds = array<i64: 1, 32, 1>}, {pipeline_mode = #tpu.pipeline_mode<synchronous>, transform_indices = @transform_2, window_bounds = array<i64: 32, 16>}, {pipeline_mode = #tpu.pipeline_mode<synchronous>, transform_indices = @transform_3, window_bounds = array<i64: 32, 9>}, {pipeline_mode = #tpu.pipeline_mode<synchronous>, transform_indices = @transform_4, window_bounds = array<i64: 16, 32>}, {transform_indices = @transform_5, window_bounds = array<i64: 2>}, {transform_indices = @transform_6, window_bounds = array<i64: 1, 16, 128>}]} {
    %c0 = arith.constant 0 : index
    %c0_0 = arith.constant 0 : index
    %c0_1 = arith.constant 0 : index
    %0 = vector.load %arg1[%c0, %c0_0, %c0_1] : memref<1x16x128xf32, #tpu.memory_space<vmem>>, vector<1x16x128xf32>
    %1 = vector.shape_cast %0 : vector<1x16x128xf32> to vector<16x128xf32>
    %c0_2 = arith.constant 0 : index
    %c0_3 = arith.constant 0 : index
    %2 = vector.load %arg3[%c0_2, %c0_3] : memref<32x16xf32, #tpu.memory_space<vmem>>, vector<32x16xf32>
    %c0_4 = arith.constant 0 : index
    %c0_5 = arith.constant 0 : index
    %3 = vector.load %arg5[%c0_4, %c0_5] : memref<16x32xf32, #tpu.memory_space<vmem>>, vector<16x32xf32>
    %c0_6 = arith.constant 0 : index
    %c0_7 = arith.constant 0 : index
    %4 = vector.load %arg4[%c0_6, %c0_7] : memref<32x9xf32, #tpu.memory_space<vmem>>, vector<32x9xf32>
    %5 = vector.extract_strided_slice %4 {offsets = [0, 0], sizes = [32, 1], strides = [1, 1]} : vector<32x9xf32> to vector<32x1xf32>
    %6 = vector.extract_strided_slice %4 {offsets = [0, 1], sizes = [32, 1], strides = [1, 1]} : vector<32x9xf32> to vector<32x1xf32>
    %7 = vector.extract_strided_slice %4 {offsets = [0, 2], sizes = [32, 1], strides = [1, 1]} : vector<32x9xf32> to vector<32x1xf32>
    %8 = vector.extract_strided_slice %4 {offsets = [0, 3], sizes = [32, 1], strides = [1, 1]} : vector<32x9xf32> to vector<32x1xf32>
    %9 = vector.extract_strided_slice %4 {offsets = [0, 4], sizes = [32, 1], strides = [1, 1]} : vector<32x9xf32> to vector<32x1xf32>
    %10 = vector.extract_strided_slice %4 {offsets = [0, 5], sizes = [32, 1], strides = [1, 1]} : vector<32x9xf32> to vector<32x1xf32>
    %11 = vector.extract_strided_slice %4 {offsets = [0, 6], sizes = [32, 1], strides = [1, 1]} : vector<32x9xf32> to vector<32x1xf32>
    %12 = vector.extract_strided_slice %4 {offsets = [0, 7], sizes = [32, 1], strides = [1, 1]} : vector<32x9xf32> to vector<32x1xf32>
    %13 = vector.extract_strided_slice %4 {offsets = [0, 8], sizes = [16, 1], strides = [1, 1]} : vector<32x9xf32> to vector<16x1xf32>
    %14 = tpu.iota {dimensions = array<i32: 1>} : vector<1x128xi32>
    %c128_i32 = arith.constant 128 : i32
    %15 = vector.broadcast %c128_i32 : i32 to vector<1x128xi32>
    %16 = arith.cmpi slt, %14, %15 : vector<1x128xi32>
    %17 = arith.extui %16 : vector<1x128xi1> to vector<1x128xi32>
    %18 = arith.sitofp %17 : vector<1x128xi32> to vector<1x128xf32>
    %cst = arith.constant dense<0.000000e+00> : vector<32x128xf32>
    %19 = tpu.matmul %2, %1, %cst {dimension_numbers = #tpu.dot_dimension_numbers<[1], [0], [0], [1], [0, 0, 1, 1], [], []>} : vector<32x16xf32>, vector<16x128xf32>, vector<32x128xf32> -> vector<32x128xf32>
    %c0_8 = arith.constant 0 : index
    %c0_9 = arith.constant 0 : index
    %c0_10 = arith.constant 0 : index
    %20 = vector.load %arg2[%c0_8, %c0_9, %c0_10] : memref<1x32x1xf32, #tpu.memory_space<vmem>>, vector<1x32x1xf32>
    %21 = vector.shape_cast %20 : vector<1x32x1xf32> to vector<32x1xf32>
    %22 = vector.broadcast %21 : vector<32x1xf32> to vector<32x128xf32>
    %23 = arith.addf %19, %22 : vector<32x128xf32>
    %c0_11 = arith.constant 0 : index
    %24 = memref.load %arg6[%c0_11] : memref<2xf32, #tpu.memory_space<smem>>
    %cst_12 = arith.constant 0.000000e+00 : f32
    %25 = vector.broadcast %cst_12 : f32 to vector<32x128xf32>
    %26 = arith.cmpf ogt, %23, %25 : vector<32x128xf32>
    %27 = vector.broadcast %24 : f32 to vector<32x128xf32>
    %28 = arith.mulf %27, %23 : vector<32x128xf32>
    %29 = arith.select %26, %23, %28 : vector<32x128xi1>, vector<32x128xf32>
    %30 = vector.broadcast %18 : vector<1x128xf32> to vector<32x128xf32>
    %31 = arith.mulf %29, %30 : vector<32x128xf32>
    %32 = vector.shape_cast %31 : vector<32x128xf32> to vector<1x32x128xf32>
    %cst_13 = arith.constant dense<0.000000e+00> : vector<1xf32>
    %33 = vector.multi_reduction <add>, %32, %cst_13 [1, 2] : vector<1x32x128xf32> to vector<1xf32>
    %34 = vector.shape_cast %33 : vector<1xf32> to vector<1x1x1xf32>
    %35 = vector.extract %34[0, 0, 0] : f32 from vector<1x1x1xf32>
    %36 = arith.mulf %31, %31 : vector<32x128xf32>
    %37 = vector.shape_cast %36 : vector<32x128xf32> to vector<1x32x128xf32>
    %cst_14 = arith.constant dense<0.000000e+00> : vector<1xf32>
    %38 = vector.multi_reduction <add>, %37, %cst_14 [1, 2] : vector<1x32x128xf32> to vector<1xf32>
    %39 = vector.shape_cast %38 : vector<1xf32> to vector<1x1x1xf32>
    %40 = vector.extract %39[0, 0, 0] : f32 from vector<1x1x1xf32>
    %cst_15 = arith.constant 2.44140625E-4 : f32
    %41 = arith.mulf %35, %cst_15 : f32
    %cst_16 = arith.constant 2.44140625E-4 : f32
    %42 = arith.mulf %40, %cst_16 : f32
    %43 = arith.mulf %41, %41 : f32
    %44 = arith.subf %42, %43 : f32
    %cst_17 = arith.constant 0.000000e+00 : f32
    %45 = arith.maximumf %44, %cst_17 : f32
    %cst_18 = arith.constant 9.99999997E-7 : f32
    %46 = arith.addf %45, %cst_18 : f32
    %47 = math.rsqrt %46 : f32
    %48 = vector.broadcast %47 : f32 to vector<32x1xf32>
    %49 = arith.mulf %5, %48 : vector<32x1xf32>
    %50 = vector.broadcast %41 : f32 to vector<32x1xf32>
    %51 = arith.mulf %50, %49 : vector<32x1xf32>
    %52 = arith.subf %6, %51 : vector<32x1xf32>
    %53 = vector.broadcast %49 : vector<32x1xf32> to vector<32x128xf32>
    %54 = arith.mulf %29, %53 : vector<32x128xf32>
    %55 = vector.broadcast %52 : vector<32x1xf32> to vector<32x128xf32>
    %56 = arith.addf %54, %55 : vector<32x128xf32>
    %57 = vector.broadcast %18 : vector<1x128xf32> to vector<32x128xf32>
    %58 = arith.mulf %56, %57 : vector<32x128xf32>
    %59 = vector.broadcast %8 : vector<32x1xf32> to vector<32x128xf32>
    %60 = arith.mulf %58, %59 : vector<32x128xf32>
    %61 = vector.broadcast %10 : vector<32x1xf32> to vector<32x128xf32>
    %62 = arith.addf %60, %61 : vector<32x128xf32>
    %c1_i32 = arith.constant 1 : i32
    %63 = tpu.dynamic_rotate %58 by %c1_i32 dim 1 : vector<32x128xf32>, i32 -> vector<32x128xf32>
    %c127_i32 = arith.constant 127 : i32
    %64 = tpu.dynamic_rotate %58 by %c127_i32 dim 1 : vector<32x128xf32>, i32 -> vector<32x128xf32>
    %c1_i32_19 = arith.constant 1 : i32
    %65 = vector.broadcast %c1_i32_19 : i32 to vector<1x128xi32>
    %66 = arith.cmpi sge, %14, %65 : vector<1x128xi32>
    %cst_20 = arith.constant 0.000000e+00 : f32
    %67 = vector.shape_cast %66 : vector<1x128xi1> to vector<1x128xi1>
    %68 = vector.broadcast %67 : vector<1x128xi1> to vector<32x128xi1>
    %69 = vector.broadcast %cst_20 : f32 to vector<32x128xf32>
    %70 = arith.select %68, %63, %69 : vector<32x128xi1>, vector<32x128xf32>
    %c127_i32_21 = arith.constant 127 : i32
    %71 = vector.broadcast %c127_i32_21 : i32 to vector<1x128xi32>
    %72 = arith.cmpi slt, %14, %71 : vector<1x128xi32>
    %cst_22 = arith.constant 0.000000e+00 : f32
    %73 = vector.shape_cast %72 : vector<1x128xi1> to vector<1x128xi1>
    %74 = vector.broadcast %73 : vector<1x128xi1> to vector<32x128xi1>
    %75 = vector.broadcast %cst_22 : f32 to vector<32x128xf32>
    %76 = arith.select %74, %64, %75 : vector<32x128xi1>, vector<32x128xf32>
    %77 = vector.broadcast %7 : vector<32x1xf32> to vector<32x128xf32>
    %78 = arith.mulf %70, %77 : vector<32x128xf32>
    %79 = arith.addf %62, %78 : vector<32x128xf32>
    %80 = vector.broadcast %9 : vector<32x1xf32> to vector<32x128xf32>
    %81 = arith.mulf %76, %80 : vector<32x128xf32>
    %82 = arith.addf %79, %81 : vector<32x128xf32>
    %c1 = arith.constant 1 : index
    %83 = memref.load %arg6[%c1] : memref<2xf32, #tpu.memory_space<smem>>
    %cst_23 = arith.constant 0.000000e+00 : f32
    %84 = vector.broadcast %cst_23 : f32 to vector<32x128xf32>
    %85 = arith.cmpf ogt, %82, %84 : vector<32x128xf32>
    %86 = vector.broadcast %83 : f32 to vector<32x128xf32>
    %87 = arith.mulf %86, %82 : vector<32x128xf32>
    %88 = arith.select %85, %82, %87 : vector<32x128xi1>, vector<32x128xf32>
    %89 = vector.broadcast %18 : vector<1x128xf32> to vector<32x128xf32>
    %90 = arith.mulf %88, %89 : vector<32x128xf32>
    %91 = vector.shape_cast %90 : vector<32x128xf32> to vector<1x32x128xf32>
    %cst_24 = arith.constant dense<0.000000e+00> : vector<1xf32>
    %92 = vector.multi_reduction <add>, %91, %cst_24 [1, 2] : vector<1x32x128xf32> to vector<1xf32>
    %93 = vector.shape_cast %92 : vector<1xf32> to vector<1x1x1xf32>
    %94 = vector.extract %93[0, 0, 0] : f32 from vector<1x1x1xf32>
    %95 = arith.mulf %90, %90 : vector<32x128xf32>
    %96 = vector.shape_cast %95 : vector<32x128xf32> to vector<1x32x128xf32>
    %cst_25 = arith.constant dense<0.000000e+00> : vector<1xf32>
    %97 = vector.multi_reduction <add>, %96, %cst_25 [1, 2] : vector<1x32x128xf32> to vector<1xf32>
    %98 = vector.shape_cast %97 : vector<1xf32> to vector<1x1x1xf32>
    %99 = vector.extract %98[0, 0, 0] : f32 from vector<1x1x1xf32>
    %cst_26 = arith.constant 2.44140625E-4 : f32
    %100 = arith.mulf %94, %cst_26 : f32
    %cst_27 = arith.constant 2.44140625E-4 : f32
    %101 = arith.mulf %99, %cst_27 : f32
    %102 = arith.mulf %100, %100 : f32
    %103 = arith.subf %101, %102 : f32
    %cst_28 = arith.constant 0.000000e+00 : f32
    %104 = arith.maximumf %103, %cst_28 : f32
    %cst_29 = arith.constant 9.99999997E-7 : f32
    %105 = arith.addf %104, %cst_29 : f32
    %106 = math.rsqrt %105 : f32
    %107 = vector.broadcast %106 : f32 to vector<32x1xf32>
    %108 = arith.mulf %11, %107 : vector<32x1xf32>
    %109 = vector.broadcast %100 : f32 to vector<32x1xf32>
    %110 = arith.mulf %109, %108 : vector<32x1xf32>
    %111 = arith.subf %12, %110 : vector<32x1xf32>
    %112 = vector.broadcast %108 : vector<32x1xf32> to vector<32x128xf32>
    %113 = arith.mulf %88, %112 : vector<32x128xf32>
    %114 = vector.broadcast %111 : vector<32x1xf32> to vector<32x128xf32>
    %115 = arith.addf %113, %114 : vector<32x128xf32>
    %cst_30 = arith.constant dense<0.000000e+00> : vector<16x128xf32>
    %116 = tpu.matmul %3, %115, %cst_30 {dimension_numbers = #tpu.dot_dimension_numbers<[1], [0], [0], [1], [0, 0, 1, 1], [], []>} : vector<16x32xf32>, vector<32x128xf32>, vector<16x128xf32> -> vector<16x128xf32>
    %117 = vector.broadcast %13 : vector<16x1xf32> to vector<16x128xf32>
    %118 = arith.addf %116, %117 : vector<16x128xf32>
    %119 = arith.addf %1, %118 : vector<16x128xf32>
    %cst_31 = arith.constant 0.000000e+00 : f32
    %120 = vector.shape_cast %16 : vector<1x128xi1> to vector<1x128xi1>
    %121 = vector.broadcast %120 : vector<1x128xi1> to vector<16x128xi1>
    %122 = vector.broadcast %cst_31 : f32 to vector<16x128xf32>
    %123 = arith.select %121, %119, %122 : vector<16x128xi1>, vector<16x128xf32>
    %c0_32 = arith.constant 0 : index
    %c0_33 = arith.constant 0 : index
    %c0_34 = arith.constant 0 : index
    %124 = vector.load %arg7[%c0_32, %c0_33, %c0_34] : memref<1x16x128xf32, #tpu.memory_space<vmem>>, vector<1x16x128xf32>
    %125 = vector.shape_cast %124 : vector<1x16x128xf32> to vector<16x128xf32>
    %126 = vector.shape_cast %123 : vector<16x128xf32> to vector<1x16x128xf32>
    tpu.vector_store %arg7[%c0_32, %c0_33, %c0_34], %126 {strides = array<i32>} : memref<1x16x128xf32, #tpu.memory_space<vmem>>, vector<1x16x128xf32>,
    return
  }
  func.func @transform_0(%arg0: i32) -> (i32, i32, i32) {
    %c0_i32 = arith.constant 0 : i32
    %c0_i32_0 = arith.constant 0 : i32
    %c0_i32_1 = arith.constant 0 : i32
    return %arg0, %c0_i32, %c0_i32_0 : i32, i32, i32
  }
  func.func @transform_1(%arg0: i32) -> (i32, i32, i32) {
    %c0_i32 = arith.constant 0 : i32
    %c0_i32_0 = arith.constant 0 : i32
    %c0_i32_1 = arith.constant 0 : i32
    return %arg0, %c0_i32, %c0_i32_0 : i32, i32, i32
  }
  func.func @transform_2(%arg0: i32) -> (i32, i32) {
    %c0_i32 = arith.constant 0 : i32
    %c0_i32_0 = arith.constant 0 : i32
    %c0_i32_1 = arith.constant 0 : i32
    return %c0_i32, %c0_i32_0 : i32, i32
  }
  func.func @transform_3(%arg0: i32) -> (i32, i32) {
    %c0_i32 = arith.constant 0 : i32
    %c0_i32_0 = arith.constant 0 : i32
    %c0_i32_1 = arith.constant 0 : i32
    return %c0_i32, %c0_i32_0 : i32, i32
  }
  func.func @transform_4(%arg0: i32) -> (i32, i32) {
    %c0_i32 = arith.constant 0 : i32
    %c0_i32_0 = arith.constant 0 : i32
    %c0_i32_1 = arith.constant 0 : i32
    return %c0_i32, %c0_i32_0 : i32, i32
  }
  func.func @transform_5(%arg0: i32) -> i32 {
    %c0_i32 = arith.constant 0 : i32
    %c0_i32_0 = arith.constant 0 : i32
    return %c0_i32 : i32
  }
  func.func @transform_6(%arg0: i32) -> (i32, i32, i32) {
    %c0_i32 = arith.constant 0 : i32
    %c0_i32_0 = arith.constant 0 : i32
    %c0_i32_1 = arith.constant 0 : i32
    return %arg0, %c0_i32, %c0_i32_0 : i32, i32, i32
  }
}

</mosaic_0001>

<bundles_post_ra>
// kernel: tpu_custom_call.1
= control target key start
LH: loop header
LB: loop body
LE: loop exit
PB: predicated region body
PF: predicated region fallthrough
CT: control target
= control target key end

     0   :  { %11 = vsyncpa [#allocation4], 0  ;;  %s1599_s0 = inlined_call_operand.vmem [shape: f32[2,16,128], index: 0, kind: input, shape index: {}]   ;;  %s1600_s1 = inlined_call_operand.vmem [shape: f32[2,32,1], index: 1, kind: input, shape index: {}]   ;;  %s1601_s2 = inlined_call_operand.vmem [shape: f32[32,16], index: 2, kind: input, shape index: {}]   ;;  %s1602_s3 = inlined_call_operand.vmem [shape: f32[32,9], index: 3, kind: input, shape index: {}]   ;;  %s1603_s4 = inlined_call_operand.vmem [shape: f32[16,32], index: 4, kind: input, shape index: {}]   ;;  %s1604_s5 = inlined_call_operand.vmem [shape: f32[2], index: 5, kind: input, shape index: {}]   ;;  %s1605_s6 = inlined_call_operand.hbm [shape: f32[2,16,128], index: 6, kind: output, shape index: {}]  }
   0x1   :  { %12 = vsyncpa [#allocation3], 0 }
   0x2   :  { %14 = vsyncpa [#allocation3 + $0x1], 0  ;;  %s1319_s21 = smov 0   ;;  %s1321_s22 = smov 0  }
   0x3   :  { %s1323_s23 = smov 0   ;;  %s1325_s24 = smov 0  }
   0x4 LB: > { %s1340_s25 = sadd.s32 4294967295, %s1266_s24   ;;  %s1012_s26 = sadd.s32 4294967294, %s1266_s24   ;;  %s1266_s24 = sphi %s1325_s24, %s1612_s24   ;;  %s1262_s23 = sphi %s1323_s23, %s1611_s23   ;;  %s1258_s22 = sphi %s1321_s22, %s1610_s22   ;;  %s1254_s21 = sphi %s1319_s21, %s1609_s21  }
   0x5   : > { %s1344_s27 = sadd.s32 1, %s1266_s24   ;;  %s163_s28 = sadd.s32 1, %s1262_s23 }
   0x6   : > { %s160_s29 = ssub.s32 %s1266_s24, %s1344_s27  ;;  %p173_p0 = scmp.ne.s32.totalorder %s1262_s23, %s1258_s22 }
   0x7   : > { %p161_p1 = scmp.eq.s32.totalorder %s160_s29, 0  ;;  %p174_p2 = scmp.eq.s32.totalorder %s1340_s25, 1 }
   0x8   : > { %p179_p3 = scmp.ne.s32.totalorder %s1258_s22, %s1254_s21  ;;  %p180_p4 = scmp.eq.s32.totalorder %s1012_s26, 1 }
   0x9   : > { %s1355_s30 = scalar_select %p161_p1, %s1262_s23, %s163_s28  }
   0xa   : > { %p1357_p5 = por %p174_p2, %p173_p0  ;;  %p1361_p6 = por %p180_p4, %p179_p3 }
   0xb   : > { %p1013_p7 = scmp.ge.s32.totalorder %s1266_s24, 1  ;;  %p187_p8 = scmp.lt.s32.totalorder %s1266_s24, 3 }
   0xc   : > { %p1109_p9 = scmp.eq.s32.totalorder %s1340_s25, 0  ;;  %s209_s12 = sshll.u32 %s1604_s5, 4  ;;  %s210_s12 = int_to_ptr.vmem [resolvable:$true] %s209_s12 }
   0xd   : > { %p1368_p10 = pnand %p1013_p7, %p187_p8  ;;  %s1185_s13 = scalar_lea.vmem %s210_s12, 16 }
   0xe   : > { %p1186_p13 = scmp.ne.s32.totalorder %s210_s12, %s1185_s13  ;;  %p1193_p3 = scmp.lt.s32.totalorder %s210_s12, %s210_s12 }
   0xf   : > { %p1101_p11 = pneg %p1368_p10  ;;  %p1194_p4 = scmp.lt.s32.totalorder %s1185_s13, %s1185_s13 }
  0x11   : > { %p1102_p12 = pnand %p1109_p9, %p1101_p11  ;;  %p1195_p7 = por %p1194_p4, %p1193_p3 }
  0x13   : > { %p1187_p0 = pneg %p1102_p12 }
  0x15   : > { %p1188_p1 = pnand %p1187_p0, %p1186_p13 }
  0x17   : > { %p1189_p2 = pneg %p1188_p1 }
  0x19   : > { %p1196_p8 = pnand %p1195_p7, %p1189_p2 }
  0x1b   : > { %1199 = shalt.err (!%p1196_p8)
}
  0x1c   : > { %s1268_s14 = smov [#allocation2]   ;;  %238 = sbr.rel (%p1368_p10) target bundleno = 1714 (0x6b2), region = 44 }
  0x1d   : > { %1104 = dma.vmem_to_smem (!%p1102_p12), %s210_s12, 16, %s1268_s14, [#allocation4]  }
  0x23   : > { %1245 = dma.done.wait (%p1109_p9), [#allocation4], 16  }
  0x24   : > { %1247 = vsyncadd (%p1109_p9), [#allocation4], 4294967280 }
  0x25   : > { %244 = sfence }
  0x26   : > { %p274_p11 = scmp.lt.s32.totalorder %s1340_s25, 1  ;;  %v286_v0 = vld [vmem:[%s1601_s2] sm:$0xff]  ;;  %vm325_vm0 = vcmask 130048   ;;  %v1269_v1 = vmov 0   ;;  %v287_v9 = vld [vmem:[%s1601_s2 + $0x8] sm:$0xff]  ;;  %v288_v10 = vld [vmem:[%s1601_s2 + $0x10] sm:$0xff] }
  0x27   : > { %1054 = vmatprep.mubr.msk.f32.mxu0 %vm325_vm0, %v286_v0  ;;  %1159 = vset.pattern.permute.xlu0 %v1269_v1  ;;  %v289_v11 = vld [vmem:[%s1601_s2 + $0x18] sm:$0xff]  ;;  %s1270_s9 = smov 0.0   ;;  %v1439_v59 = vld [vmem:[%s1602_s3] sm:$0xff]  ;;  %v1444_v60 = vld [vmem:[%s1602_s3 + $0x8] sm:$0xff]  ;;  %vm823_vm11 = vcmask 261120  }
  0x28   : > { %s275_s17 = scalar_select %p274_p11, %s1340_s25, 1  ;;  %1160 = vset.pattern.permute.xlu1 %v1269_v1  ;;  %v1449_v61 = vld [vmem:[%s1602_s3 + $0x10] sm:$0xff]  ;;  %v1454_v62 = vld [vmem:[%s1602_s3 + $0x18] sm:$0xff] }
  0x2a   : > { %s1035_s18 = sshll.u32 %s275_s17, 4  ;;  %s1036_s19 = sshll.u32 %s275_s17, 5 }
  0x2b   : > { %s278_s28 = scalar_lea.vmem %s1599_s0, %s1035_s18  ;;  %s283_s10 = scalar_lea.vmem %s1600_s1, %s1036_s19 }
  0x2c   : > { %v1397_v2 = vld [vmem:[%s278_s28] sm:$0xff]  ;;  %v1399_v3 = vld [vmem:[%s278_s28 + $0x8] sm:$0xff]  ;;  %v303_v6 = vld [vmem:[%s283_s10 + $0x10] sm:$0xff]  ;;  %s423_s17 = sld [smem:[#allocation2]] }
  0x2d   : > { %v301_v4 = vld [vmem:[%s283_s10] sm:$0xff]  ;;  %v1071_v5 = vpack.c.bf16 %v1399_v3, %v1397_v2  ;;  %317 = vperm.xlu1 %1160, %v303_v6   ;;  %v302_v7 = vld [vmem:[%s283_s10 + $0x8] sm:$0xff]  ;;  %v304_v8 = vld [vmem:[%s283_s10 + $0x18] sm:$0xff] }
  0x2e   : > { %307 = vperm.xlu0 %1159, %v301_v4  }
  0x2f   : > { %1072 = vmatprep.subr.bf16.mxu0 %v1071_v5 }
  0x30   : > { %1074 = vmatpush3.bf16.msra.mxu0 %v1071_v5 }
  0x31   : > { %322 = vperm.xlu1 %1160, %v304_v8  }
  0x32   : > { %312 = vperm.xlu0 %1159, %v302_v7   ;;  %v428_v16 = vstv %s423_s17 }
  0x33   : > { %1055 = vmatmul.mubr.msk.f32.vlgmr.msra.gmra.mrb[0].mxu0 %vm325_vm0, %v287_v9 }
  0x34   : > { %1057 = vmatprep.mubr.msk.f32.mxu0 %vm325_vm0, %v288_v10 }
  0x37   : > { %1058 = vmatmul.mubr.msk.f32.gmra.mrb[2].mxu0 %vm325_vm0, %v289_v11  ;;  %v1272_v11 = vmov 1  }
  0xac   : > { %v318_v13 = vpop.permute.xlu1 %317 }
  0xad   : > { %v308_v12 = vpop.permute.xlu0 %307 }
  0xb0   : > { %v323_v20 = vpop.permute.xlu1 %322 }
  0xb1   : > { %v313_v14 = vpop.permute.xlu0 %312 }
 0x106   : > { %v1056_v15 = vpop.f32.mrb[0].mxu0 }
 0x107   : > { %v410_v17 = vadd.f32 %v1056_v15, %v313_v14  ;;  %v404_v18 = vpop.f32.mrb[1].mxu0 }
 0x108   : > { %v405_v19 = vadd.f32 %v404_v18, %v308_v12 }
 0x109   : > { %vm425_vm1 = vcmp.gt.f32.partialorder %v410_v17, 0.0  ;;  %v430_v21 = vmul.f32 %v428_v16, %v410_v17 }
 0x10a   : > { %vm424_vm2 = vcmp.gt.f32.partialorder %v405_v19, 0.0  ;;  %v429_v22 = vmul.f32 %v428_v16, %v405_v19  ;;  %v1059_v23 = vpop.f32.mrb[2].mxu0 }
 0x10b   : > { %v1415_v24 = vsel %vm425_vm1, %v410_v17, %v430_v21  ;;  %v420_v25 = vadd.f32 %v1059_v23, %v323_v20  ;;  %v414_v26 = vpop.f32.mrb[3].mxu0  ;;  %v1273_v20 = vmov 5   ;;  %v1274_v21 = vmov 3  }
 0x10c   : > { %v1417_v27 = vsel %vm424_vm2, %v405_v19, %v429_v22  ;;  %v415_v28 = vadd.f32 %v414_v26, %v318_v13  ;;  %v454_v29 = vmul.f32 %v1415_v24, %v1415_v24  ;;  %v1275_v22 = vmov 2  }
 0x10d   : > { %v453_v30 = vmul.f32 %v1417_v27, %v1417_v27  ;;  %vm427_vm3 = vcmp.gt.f32.partialorder %v420_v25, 0.0  ;;  %v432_v31 = vmul.f32 %v428_v16, %v420_v25  ;;  %v441_v33 = vadd.f32 %v1415_v24, %v1417_v27 }
 0x10e   : > { %vm426_vm4 = vcmp.gt.f32.partialorder %v415_v28, 0.0  ;;  %v431_v32 = vmul.f32 %v428_v16, %v415_v28  ;;  %v1276_v23 = vmov 4  }
 0x10f   : > { %v1427_v35 = vsel %vm427_vm3, %v420_v25, %v432_v31  ;;  %v457_v38 = vadd.f32 %v454_v29, %v453_v30 }
 0x110   : > { %v1425_v34 = vsel %vm426_vm4, %v415_v28, %v431_v32  ;;  %v456_v40 = vmul.f32 %v1427_v35, %v1427_v35 }
 0x111   : > { %v442_v36 = vadd.f32 %v441_v33, %v1425_v34  ;;  %v455_v37 = vmul.f32 %v1425_v34, %v1425_v34 }
 0x113   : > { %v443_v39 = vadd.f32 %v442_v36, %v1427_v35  ;;  %v458_v41 = vadd.f32 %v457_v38, %v455_v37 }
 0x115   : > { %444 = vadd.xlane.f32.xlu0 %v443_v39  ;;  %v459_v42 = vadd.f32 %v458_v41, %v456_v40 }
 0x117   : > { %460 = vadd.xlane.f32.xlu1 %v459_v42 }
 0x1a2   : > { %v445_v43 = vpop.xlane.xlu0 %444 }
 0x1a3   : > { %v446_v44 = vrot.slane %v445_v43, 4 }
 0x1a4   : > { %v461_v45 = vpop.xlane.xlu1 %460 }
 0x1a5   : > { %v447_v46 = vadd.f32 %v446_v44, %v445_v43  ;;  %v462_v47 = vrot.slane %v461_v45, 4 }
 0x1a7   : > { %v448_v48 = vrot.slane %v447_v46, 2  ;;  %v463_v49 = vadd.f32 %v462_v47, %v461_v45 }
 0x1a9   : > { %v464_v50 = vrot.slane %v463_v49, 2  ;;  %v449_v51 = vadd.f32 %v448_v48, %v447_v46 }
 0x1ab   : > { %v450_v52 = vrot.slane %v449_v51, 1  ;;  %v465_v53 = vadd.f32 %v464_v50, %v463_v49 }
 0x1ad   : > { %v451_v54 = vadd.f32 %v450_v52, %v449_v51  ;;  %v466_v55 = vrot.slane %v465_v53, 1 }
 0x1af   : > { %1083 = vpush %v451_v54  ;;  %v467_v56 = vadd.f32 %v466_v55, %v465_v53  ;;  %v296_v54 = vlaneseq }
 0x1b1   : > { %1085 = vpush %v467_v56  ;;  %v297_v56 = vand.u32 127, %v296_v54 }
 0x1b3   : > { %vm620_vm5 = vcmp.ge.s32.totalorder %v297_v56, 1  ;;  %vm627_vm6 = vcmp.lt.s32.totalorder %v297_v56, 127 }
 0x1e0   : > { %s1084_s18 = spop %1083 }
 0x1e1   : > { %s469_s19 = smul.f32 0.00024414063, %s1084_s18 }
 0x1e2   : > { %s1086_s20 = spop %1085 }
 0x1e3   : > { %s471_s26 = smul.f32 %s469_s19, %s469_s19  ;;  %v483_v4 = vstv %s469_s19  ;;  %s1277_s19 = smov 127  }
 0x1e4   : > { %s470_s28 = smul.f32 0.00024414063, %s1086_s20 }
 0x1e6   : > { %s472_s29 = ssub.f32 %s470_s28, %s471_s26  ;;  %s1271_s28 = smov 1  }
 0x1e8   : > { %s473_s10 = smax.f32 %s1270_s9, %s472_s29  ;;  %s1027_s29 = sld [smem:[#allocation2 + $0x1]] }
 0x1e9   : > { %s474_s11 = sadd.f32 1e-06, %s473_s10 }
 0x1eb   : > { %v475_v57 = vstv %s474_s11 }
 0x1ec   : > { %1181 = vrsqrt.f32 %v475_v57 }
 0x1f6   : > { %v1182_v58 = vpop.eup %1181 }
 0x1f7   : > { %1087 = vpush %v1182_v58 }
 0x228   : > { %s1088_s16 = spop %1087 }
 0x229   : > { %v478_v63 = vstv %s1088_s16 }
 0x22a   : > { %v479_v0 = vmul.f32 %v478_v63, %v1439_v59  ;;  %v480_v1 = vmul.f32 %v478_v63, %v1444_v60  ;;  %v481_v5 = vmul.f32 %v478_v63, %v1449_v61  ;;  %v482_v6 = vmul.f32 %v478_v63, %v1454_v62 }
 0x22c   : > { %v485_v7 = vmul.f32 %v483_v4, %v480_v1  ;;  %v484_v8 = vmul.f32 %v483_v4, %v479_v0  ;;  %v487_v9 = vmul.f32 %v483_v4, %v482_v6  ;;  %v486_v10 = vmul.f32 %v483_v4, %v481_v5 }
 0x22e   : > { %494 = vrot.lane.b32.xlu1 %v485_v7, %s1271_s28  ;;  %492 = vrot.lane.b32.xlu0 %v484_v8, %s1271_s28 }
 0x232   : > { %498 = vrot.lane.b32.xlu1 %v487_v9, %s1271_s28  ;;  %496 = vrot.lane.b32.xlu0 %v486_v10, %s1271_s28 }
 0x236   : > { %515 = vperm.xlu1 %1160, %v480_v1   ;;  %510 = vperm.xlu0 %1159, %v479_v0  }
 0x23a   : > { %525 = vperm.xlu1 %1160, %v482_v6   ;;  %520 = vperm.xlu0 %1159, %v481_v5  }
 0x23e   : > { %1161 = vset.pattern.permute.xlu1 %v1272_v11  ;;  %1162 = vset.pattern.permute.xlu0 %v1272_v11 }
 0x2a0   : > { %v495_v12 = vpop.permute.xlu1 %494  ;;  %v493_v13 = vpop.permute.xlu0 %492 }
 0x2a1   : > { %v505_v14 = vsub.f32 %v1444_v60, %v495_v12  ;;  %v504_v15 = vsub.f32 %v1439_v59, %v493_v13 }
 0x2a3   : > { %539 = vperm.xlu0 %1162, %v505_v14   ;;  %534 = vperm.xlu1 %1161, %v504_v15  }
 0x2a4   : > { %v499_v16 = vpop.permute.xlu1 %498  ;;  %v497_v17 = vpop.permute.xlu0 %496 }
 0x2a5   : > { %v507_v18 = vsub.f32 %v1454_v62, %v499_v16  ;;  %v506_v19 = vsub.f32 %v1449_v61, %v497_v17 }
 0x2a7   : > { %549 = vperm.xlu0 %1162, %v507_v18   ;;  %544 = vperm.xlu1 %1161, %v506_v19  }
 0x2ab   : > { %1165 = vset.pattern.permute.xlu0 %v1273_v20  ;;  %1163 = vset.pattern.permute.xlu1 %v1274_v21 }
 0x2ac   : > { %589 = vperm.xlu0 %1165, %v1444_v60   ;;  %562 = vperm.xlu1 %1163, %v1439_v59  }
 0x2b0   : > { %1166 = vset.pattern.permute.xlu0 %v1274_v21  ;;  %572 = vperm.xlu1 %1163, %v1449_v61  }
 0x2b1   : > { %567 = vperm.xlu0 %1166, %v1444_v60  }
 0x2b4   : > { %1164 = vset.pattern.permute.xlu1 %v1273_v20 }
 0x2b5   : > { %577 = vperm.xlu0 %1166, %v1454_v62   ;;  %585 = vperm.xlu1 %1164, %v1439_v59   ;;  %v516_v25 = vpop.permute.xlu1 %515  ;;  %v511_v26 = vpop.permute.xlu0 %510 }
 0x2b6   : > { %v529_v30 = vmul.f32 %v516_v25, %v1415_v24  ;;  %v528_v31 = vmul.f32 %v511_v26, %v1417_v27 }
 0x2b9   : > { %1167 = vset.pattern.permute.xlu1 %v1275_v22  ;;  %1170 = vset.pattern.permute.xlu0 %v1276_v23  ;;  %v526_v28 = vpop.permute.xlu1 %525  ;;  %v521_v29 = vpop.permute.xlu0 %520 }
 0x2ba   : > { %635 = vperm.xlu1 %1167, %v1439_v59   ;;  %659 = vperm.xlu0 %1170, %v1439_v59   ;;  %v530_v38 = vmul.f32 %v521_v29, %v1425_v34  ;;  %v531_v42 = vmul.f32 %v526_v28, %v1427_v35 }
 0x2be   : > { %639 = vperm.xlu1 %1167, %v1444_v60   ;;  %1173 = vset.pattern.permute.xlu0 %v1275_v22 }
 0x2bf   : > { %647 = vperm.xlu0 %1173, %v1454_v62  }
 0x2c2   : > { %1168 = vset.pattern.permute.xlu1 %v1273_v20 }
 0x2c3   : > { %593 = vperm.xlu1 %1168, %v1449_v61  }
 0x2c7   : > { %1169 = vset.pattern.permute.xlu1 %v1275_v22  ;;  %v687_v22 = vstv %s1027_s29 }
 0x2c8   : > { %643 = vperm.xlu1 %1169, %v1449_v61  }
 0x2cc   : > { %1171 = vset.pattern.permute.xlu1 %v1276_v23 }
 0x2cd   : > { %663 = vperm.xlu1 %1171, %v1444_v60  }
 0x2d1   : > { %1172 = vset.pattern.permute.xlu1 %v1273_v20 }
 0x2d2   : > { %597 = vperm.xlu1 %1172, %v1454_v62  }
 0x2d6   : > { %1174 = vset.pattern.permute.xlu1 %v1276_v23 }
 0x2d7   : > { %667 = vperm.xlu1 %1174, %v1449_v61  }
 0x2db   : > { %671 = vperm.xlu1 %1174, %v1454_v62  }
 0x322   : > { %v535_v32 = vpop.permute.xlu1 %534  ;;  %v540_v33 = vpop.permute.xlu0 %539 }
 0x323   : > { %v552_v36 = vadd.f32 %v535_v32, %v528_v31  ;;  %v553_v37 = vadd.f32 %v540_v33, %v529_v30 }
 0x325   : > { %604 = vrot.lane.b32.xlu1 %v552_v36, %s1271_s28  ;;  %606 = vrot.lane.b32.xlu0 %v553_v37, %s1271_s28 }
 0x326   : > { %v545_v39 = vpop.permute.xlu1 %544  ;;  %v550_v41 = vpop.permute.xlu0 %549 }
 0x327   : > { %v554_v40 = vadd.f32 %v545_v39, %v530_v38  ;;  %v555_v24 = vadd.f32 %v550_v41, %v531_v42 }
 0x329   : > { %612 = vrot.lane.b32.xlu1 %v552_v36, %s1277_s19  ;;  %608 = vrot.lane.b32.xlu0 %v554_v40, %s1271_s28 }
 0x32b   : > { %v563_v27 = vpop.permute.xlu1 %562  ;;  %v590_v47 = vpop.permute.xlu0 %589 }
 0x32c   : > { %v580_v1 = vmul.f32 %v563_v27, %v552_v36 }
 0x32d   : > { %614 = vrot.lane.b32.xlu0 %v553_v37, %s1277_s19  ;;  %610 = vrot.lane.b32.xlu1 %v555_v24, %s1271_s28 }
 0x32f   : > { %v573_v34 = vpop.permute.xlu1 %572 }
 0x330   : > { %v568_v49 = vpop.permute.xlu0 %567  ;;  %v582_v15 = vmul.f32 %v573_v34, %v554_v40 }
 0x331   : > { %616 = vrot.lane.b32.xlu0 %v554_v40, %s1277_s19  ;;  %618 = vrot.lane.b32.xlu1 %v555_v24, %s1277_s19  ;;  %v581_v6 = vmul.f32 %v568_v49, %v553_v37  ;;  %s271_s19 = sand.u32 1, %s1258_s22  }
 0x332   : > { %s1018_s29 = sshll.u32 %s271_s19, 4 }
 0x333   : > { %v601_v16 = vadd.f32 %v590_v47, %v581_v6 }
 0x334   : > { %v586_v43 = vpop.permute.xlu1 %585  ;;  %v578_v50 = vpop.permute.xlu0 %577 }
 0x335   : > { %v600_v7 = vadd.f32 %v586_v43, %v580_v1  ;;  %v583_v21 = vmul.f32 %v578_v50, %v555_v24 }
 0x339   : > { %v636_v44 = vpop.permute.xlu1 %635  ;;  %v660_v52 = vpop.permute.xlu0 %659 }
 0x33d   : > { %v640_v45 = vpop.permute.xlu1 %639 }
 0x33e   : > { %v648_v55 = vpop.permute.xlu0 %647 }
 0x342   : > { %v594_v46 = vpop.permute.xlu1 %593 }
 0x343   : > { %v602_v26 = vadd.f32 %v594_v46, %v582_v15  ;;  %v1278_v15 = vmov 6  }
 0x344   : > { %1175 = vset.pattern.permute.xlu0 %v1278_v15  ;;  %1176 = vset.pattern.permute.xlu1 %v1278_v15 }
 0x347   : > { %v644_v48 = vpop.permute.xlu1 %643 }
 0x34c   : > { %v664_v35 = vpop.permute.xlu1 %663 }
 0x351   : > { %v598_v51 = vpop.permute.xlu1 %597 }
 0x352   : > { %v603_v31 = vadd.f32 %v598_v51, %v583_v21 }
 0x356   : > { %v668_v53 = vpop.permute.xlu1 %667 }
 0x35a   : > { %v672_v57 = vpop.permute.xlu1 %671 }
 0x397   : > { %v605_v58 = vpop.permute.xlu1 %604  ;;  %v607_v63 = vpop.permute.xlu0 %606 }
 0x398   : > { %v623_v0 = vsel %vm620_vm5, %v605_v58, 0.0  ;;  %v624_v5 = vsel %vm620_vm5, %v607_v63, 0.0 }
 0x399   : > { %v650_v4 = vmul.f32 %v636_v44, %v623_v0  ;;  %v651_v13 = vmul.f32 %v640_v45, %v624_v5 }
 0x39b   : > { %v613_v8 = vpop.permute.xlu1 %612  ;;  %v609_v9 = vpop.permute.xlu0 %608  ;;  %v654_v12 = vadd.f32 %v650_v4, %v600_v7  ;;  %v655_v28 = vadd.f32 %v651_v13, %v601_v16 }
 0x39c   : > { %v630_v10 = vsel %vm627_vm6, %v613_v8, 0.0  ;;  %v625_v11 = vsel %vm620_vm5, %v609_v9, 0.0 }
 0x39d   : > { %v674_v14 = vmul.f32 %v660_v52, %v630_v10  ;;  %v652_v18 = vmul.f32 %v644_v48, %v625_v11 }
 0x39f   : > { %v678_v17 = vadd.f32 %v674_v14, %v654_v12  ;;  %v611_v19 = vpop.permute.xlu1 %610  ;;  %v615_v20 = vpop.permute.xlu0 %614  ;;  %v656_v33 = vadd.f32 %v652_v18, %v602_v26 }
 0x3a0   : > { %v626_v23 = vsel %vm620_vm5, %v611_v19, 0.0  ;;  %v631_v25 = vsel %vm627_vm6, %v615_v20, 0.0 }
 0x3a1   : > { %v653_v29 = vmul.f32 %v648_v55, %v626_v23  ;;  %v675_v30 = vmul.f32 %v664_v35, %v631_v25  ;;  %v688_v32 = vmul.f32 %v687_v22, %v678_v17  ;;  %vm683_vm7 = vcmp.gt.f32.partialorder %v678_v17, 0.0 }
 0x3a3   : > { %v679_v36 = vadd.f32 %v675_v30, %v655_v28  ;;  %v619_v37 = vpop.permute.xlu1 %618  ;;  %v617_v38 = vpop.permute.xlu0 %616  ;;  %v657_v39 = vadd.f32 %v653_v29, %v603_v31  ;;  %v1500_v44 = vsel %vm683_vm7, %v678_v17, %v688_v32  ;;  %v1279_v30 = vmov 7  }
 0x3a4   : > { %v633_v40 = vsel %vm627_vm6, %v619_v37, 0.0  ;;  %v632_v41 = vsel %vm627_vm6, %v617_v38, 0.0  ;;  %v712_v35 = vmul.f32 %v1500_v44, %v1500_v44 }
 0x3a5   : > { %vm684_vm8 = vcmp.gt.f32.partialorder %v679_v36, 0.0  ;;  %v689_v42 = vmul.f32 %v687_v22, %v679_v36  ;;  %v677_v24 = vmul.f32 %v672_v57, %v633_v40  ;;  %v676_v27 = vmul.f32 %v668_v53, %v632_v41  ;;  %v290_v41 = vld [vmem:[%s1603_s4] sm:$0xff] }
 0x3a6   : > { %1068 = vmatprep.mubr.msk.f32.mxu1 %vm823_vm11, %v290_v41 }
 0x3a7   : > { %v681_v34 = vadd.f32 %v677_v24, %v657_v39  ;;  %v680_v43 = vadd.f32 %v676_v27, %v656_v33  ;;  %v1502_v45 = vsel %vm684_vm8, %v679_v36, %v689_v42  ;;  %v1280_v42 = vmov 8  }
 0x3a8   : > { %v713_v46 = vmul.f32 %v1502_v45, %v1502_v45  ;;  %v700_v49 = vadd.f32 %v1502_v45, %v1500_v44 }
 0x3a9   : > { %v691_v47 = vmul.f32 %v687_v22, %v681_v34  ;;  %v690_v48 = vmul.f32 %v687_v22, %v680_v43  ;;  %vm685_vm9 = vcmp.gt.f32.partialorder %v680_v43, 0.0  ;;  %vm686_vm10 = vcmp.gt.f32.partialorder %v681_v34, 0.0 }
 0x3aa   : > { %v716_v54 = vadd.f32 %v713_v46, %v712_v35 }
 0x3ab   : > { %v1510_v50 = vsel %vm685_vm9, %v680_v43, %v690_v48  ;;  %v1512_v51 = vsel %vm686_vm10, %v681_v34, %v691_v47 }
 0x3ac   : > { %v701_v52 = vadd.f32 %v700_v49, %v1510_v50  ;;  %v714_v53 = vmul.f32 %v1510_v50, %v1510_v50  ;;  %v715_v56 = vmul.f32 %v1512_v51, %v1512_v51 }
 0x3ae   : > { %v702_v55 = vadd.f32 %v701_v52, %v1512_v51  ;;  %v717_v57 = vadd.f32 %v716_v54, %v714_v53 }
 0x3b0   : > { %703 = vadd.xlane.f32.xlu0 %v702_v55  ;;  %v718_v58 = vadd.f32 %v717_v57, %v715_v56 }
 0x3b2   : > { %719 = vadd.xlane.f32.xlu1 %v718_v58 }
 0x43d   : > { %v704_v63 = vpop.xlane.xlu0 %703 }
 0x43e   : > { %v705_v0 = vrot.slane %v704_v63, 4 }
 0x43f   : > { %v720_v1 = vpop.xlane.xlu1 %719 }
 0x440   : > { %v706_v4 = vadd.f32 %v705_v0, %v704_v63  ;;  %v721_v5 = vrot.slane %v720_v1, 4 }
 0x442   : > { %v707_v6 = vrot.slane %v706_v4, 2  ;;  %v722_v7 = vadd.f32 %v721_v5, %v720_v1 }
 0x444   : > { %v723_v8 = vrot.slane %v722_v7, 2  ;;  %v708_v9 = vadd.f32 %v707_v6, %v706_v4 }
 0x446   : > { %v709_v10 = vrot.slane %v708_v9, 1  ;;  %v724_v11 = vadd.f32 %v723_v8, %v722_v7 }
 0x448   : > { %v710_v12 = vadd.f32 %v709_v10, %v708_v9  ;;  %v725_v13 = vrot.slane %v724_v11, 1 }
 0x44a   : > { %1089 = vpush %v710_v12  ;;  %v726_v14 = vadd.f32 %v725_v13, %v724_v11 }
 0x44c   : > { %1091 = vpush %v726_v14 }
 0x47b   : > { %s1090_s10 = spop %1089 }
 0x47c   : > { %s728_s11 = smul.f32 0.00024414063, %s1090_s10  ;;  %s273_s10 = scalar_lea.vmem [#allocation5], %s1018_s29 }
 0x47d   : > { %s1092_s12 = spop %1091 }
 0x47e   : > { %s730_s13 = smul.f32 %s728_s11, %s728_s11  ;;  %v742_v21 = vstv %s728_s11  ;;  %s926_s11 = sshll.u32 %s273_s10, 4  ;;  %s1550_s11 = int_to_ptr.vmem [resolvable:$true] %s926_s11 }
 0x47f   : > { %s729_s14 = smul.f32 0.00024414063, %s1092_s12  ;;  %s1037_s12 = sshll.u32 %s1340_s25, 8 }
 0x480   : > { %s1558_s25 = scalar_lea.sflag [#allocation3], %s271_s19 }
 0x481   : > { %s731_s15 = ssub.f32 %s729_s14, %s730_s13 }
 0x483   : > { %s732_s16 = smax.f32 %s1270_s9, %s731_s15  ;;  %s1555_s15 = scalar_lea.hbm %s1605_s6, %s1037_s12 }
 0x484   : > { %s733_s17 = sadd.f32 1e-06, %s732_s16  ;;  %s1200_s16 = scalar_lea.vmem %s1550_s11, 256 }
 0x485   : > { %p1201_p9 = scmp.ne.s32.totalorder %s1550_s11, %s1200_s16 }
 0x486   : > { %v734_v16 = vstv %s733_s17  ;;  %s1281_s17 = smov [#allocation5]  }
 0x487   : > { %1183 = vrsqrt.f32 %v734_v16  ;;  %p1202_p10 = pnand %p1201_p9, %p1357_p5 }
 0x489   : > { %p1203_p12 = pneg %p1202_p10 }
 0x491   : > { %v1184_v17 = vpop.eup %1183 }
 0x492   : > { %1093 = vpush %v1184_v17 }
 0x4c3   : > { %s1094_s18 = spop %1093 }
 0x4c4   : > { %v737_v18 = vstv %s1094_s18  ;;  %s1204_s18 = sshll.u32 %s1281_s17, 4  ;;  %s1205_s18 = int_to_ptr.vmem [resolvable:$false] %s1204_s18 }
 0x4c5   : > { %v738_v19 = vmul.f32 %v737_v18, %v1439_v59  ;;  %v739_v20 = vmul.f32 %v737_v18, %v1444_v60  ;;  %v740_v22 = vmul.f32 %v737_v18, %v1449_v61  ;;  %v741_v23 = vmul.f32 %v737_v18, %v1454_v62  ;;  %s1206_s9 = scalar_lea.vmem %s1205_s18, 512  ;;  %p1207_p13 = scmp.lt.s32.totalorder %s1550_s11, %s1205_s18 }
 0x4c6   : > { %p1208_p0 = scmp.lt.s32.totalorder %s1206_s9, %s1200_s16 }
 0x4c7   : > { %v744_v25 = vmul.f32 %v742_v21, %v739_v20  ;;  %v743_v26 = vmul.f32 %v742_v21, %v738_v19  ;;  %v746_v28 = vmul.f32 %v742_v21, %v741_v23  ;;  %v745_v29 = vmul.f32 %v742_v21, %v740_v22 }
 0x4c8   : > { %p1209_p1 = por %p1208_p0, %p1207_p13 }
 0x4c9   : > { %753 = vrot.lane.b32.xlu1 %v744_v25, %s1271_s28  ;;  %751 = vrot.lane.b32.xlu0 %v743_v26, %s1271_s28 }
 0x4ca   : > { %p1210_p2 = pnand %p1209_p1, %p1203_p12 }
 0x4cd   : > { %757 = vrot.lane.b32.xlu1 %v746_v28, %s1271_s28  ;;  %755 = vrot.lane.b32.xlu0 %v745_v29, %s1271_s28 }
 0x4d1   : > { %774 = vperm.xlu1 %1176, %v739_v20   ;;  %769 = vperm.xlu0 %1175, %v738_v19  }
 0x4d5   : > { %779 = vperm.xlu1 %1176, %v740_v22   ;;  %1178 = vset.pattern.permute.xlu0 %v1279_v30 }
 0x4d9   : > { %784 = vperm.xlu1 %1176, %v741_v23  }
 0x4dd   : > { %1177 = vset.pattern.permute.xlu1 %v1279_v30 }
 0x53b   : > { %v754_v31 = vpop.permute.xlu1 %753  ;;  %v752_v32 = vpop.permute.xlu0 %751 }
 0x53c   : > { %v764_v33 = vsub.f32 %v1444_v60, %v754_v31  ;;  %v763_v36 = vsub.f32 %v1439_v59, %v752_v32 }
 0x53e   : > { %798 = vperm.xlu0 %1178, %v764_v33   ;;  %793 = vperm.xlu1 %1177, %v763_v36  }
 0x53f   : > { %v758_v37 = vpop.permute.xlu1 %757  ;;  %v756_v38 = vpop.permute.xlu0 %755 }
 0x540   : > { %v766_v39 = vsub.f32 %v1454_v62, %v758_v37  ;;  %v765_v40 = vsub.f32 %v1449_v61, %v756_v38 }
 0x542   : > { %808 = vperm.xlu1 %1177, %v766_v39   ;;  %803 = vperm.xlu0 %1178, %v765_v40  }
 0x546   : > { %1180 = vset.pattern.permute.xlu1 %v1280_v42  ;;  %1179 = vset.pattern.permute.xlu0 %v1280_v42 }
 0x547   : > { %820 = vperm.xlu1 %1180, %v1444_v60   ;;  %816 = vperm.xlu0 %1179, %v1439_v59  }
 0x550   : > { %v775_v24 = vpop.permute.xlu1 %774  ;;  %v770_v27 = vpop.permute.xlu0 %769 }
 0x551   : > { %v788_v34 = vmul.f32 %v775_v24, %v1502_v45  ;;  %v787_v43 = vmul.f32 %v770_v27, %v1500_v44  ;;  %v291_v44 = vld [vmem:[%s1603_s4 + $0x8] sm:$0xff] }
 0x554   : > { %v780_v62 = vpop.permute.xlu1 %779 }
 0x555   : > { %v789_v35 = vmul.f32 %v780_v62, %v1510_v50 }
 0x558   : > { %v785_v61 = vpop.permute.xlu1 %784 }
 0x559   : > { %v790_v52 = vmul.f32 %v785_v61, %v1512_v51 }
 0x5bd   : > { %v794_v46 = vpop.permute.xlu1 %793  ;;  %v799_v47 = vpop.permute.xlu0 %798 }
 0x5be   : > { %v811_v48 = vadd.f32 %v794_v46, %v787_v43  ;;  %v812_v49 = vadd.f32 %v799_v47, %v788_v34 }
 0x5c0   : > { %v1075_v60 = vpack.c.bf16 %v812_v49, %v811_v48 }
 0x5c1   : > { %v809_v53 = vpop.permute.xlu1 %808  ;;  %v804_v59 = vpop.permute.xlu0 %803 }
 0x5c2   : > { %v814_v54 = vadd.f32 %v809_v53, %v790_v52  ;;  %v813_v55 = vadd.f32 %v804_v59, %v789_v35  ;;  %1076 = vmatprep.subr.bf16.mxu1 %v1075_v60 }
 0x5c3   : > { %1078 = vmatpush3.bf16.msra.mxu1 %v1075_v60 }
 0x5c4   : > { %v1079_v45 = vpack.c.bf16 %v814_v54, %v813_v55 }
 0x5c6   : > { %1080 = vmatprep.subr.bf16.mxu1 %v1079_v45  ;;  %v821_v50 = vpop.permute.xlu1 %820  ;;  %v817_v51 = vpop.permute.xlu0 %816 }
 0x5c7   : > { %1082 = vmatpush3.bf16.msra.mxu1 %v1079_v45 }
 0x5ca   : > { %1069 = vmatmul.mubr.msk.f32.vlgmr.msra.gmra.mrb[0].mxu1 %vm823_vm11, %v291_v44 }
 0x69d   : > { %v1070_v56 = vpop.f32.mrb[0].mxu1 }
 0x69e   : > { %v902_v57 = vadd.f32 %v1070_v56, %v821_v50  ;;  %v896_v58 = vpop.f32.mrb[1].mxu1 }
 0x69f   : > { %v897_v63 = vadd.f32 %v896_v58, %v817_v51 }
 0x6a0   : > { %v906_v0 = vadd.f32 %v902_v57, %v1399_v3 }
 0x6a1   : > { %v905_v1 = vadd.f32 %v897_v63, %v1397_v2 }
 0x6a2   : > { %911 = vst [vmem:[%s273_s10 + $0x8] sm:$0xff] %v906_v0 }
 0x6a3   : > { %910 = vst [vmem:[%s273_s10] sm:$0xff] %v905_v1 }
 0x6a4   : > { %1213 = shalt.err (!%p1210_p2)
}
 0x6a5   : > { %s1214_s20 = scalar_lea.hbm %s1555_s15, 256  ;;  %s1218_s19 = scalar_lea.hbm %s1605_s6, 512 }
 0x6a6   : > { %p1215_p3 = scmp.ne.s32.totalorder %s1555_s15, %s1214_s20  ;;  %p1219_p8 = scmp.lt.u32.totalorder %s1555_s15, %s1605_s6 }
 0x6a7   : > { %p1220_p11 = scmp.lt.u32.totalorder %s1218_s19, %s1214_s20  ;;  %p1222_p10 = scmp.lt.u32.totalorder %s1214_s20, %s1555_s15 }
 0x6a8   : > { %p1216_p4 = pnand %p1215_p3, %p1357_p5 }
 0x6a9   : > { %p1221_p9 = por %p1220_p11, %p1219_p8 }
 0x6aa   : > { %p1217_p7 = pneg %p1216_p4 }
 0x6ab   : > { %p1223_p12 = por %p1222_p10, %p1221_p9 }
 0x6ad   : > { %p1224_p13 = pnand %p1223_p12, %p1217_p7 }
 0x6af   : > { %1227 = shalt.err (!%p1224_p13)
}
 0x6b0   : > { %s1282_s12 = smov 128   ;;  %s1283_s13 = smov 8  }
 0x6b1   : > { %1099 = dma.vmem_to_hbm [thread:$0]  (%p1357_p5), %s1550_s11, 256, %s1555_s15, %s1558_s25, %s1282_s12, %s1282_s12, %s1283_s13  }
 0x6b2 PF: > { %p1111_p0 = scmp.ge.s32.totalorder %s1266_s24, 2  ;;  %s941_s14 = sand.u32 1, %s1254_s21  }
 0x6b3   : > { %s942_s16 = scalar_lea.sflag [#allocation3], %s941_s14 }
 0x6b4   : > { %p1106_p1 = pnand %p1111_p0, %p1361_p6 }
 0x6b6   : > { %1249 = dma.done.wait (!%p1106_p1), %s942_s16, 256  }
 0x6b7   : > { %1251 = vsyncadd (!%p1106_p1), %s942_s16, 4294967040  ;;  %p17_p2 = scmp.ge.s32.totalorder %s1344_s27, 4   ;;  %s1609_s21 = smov %s1258_s22 }
 0x6b8   : > { %s1610_s22 = smov %s1262_s23  ;;  %s1611_s23 = smov %s1355_s30 }
 0x6b9   : > { %s1612_s24 = smov %s1344_s27  ;;  %19 = sbr.rel (!%p17_p2) target bundleno = 4 (0x4), region = 87 }
 0x6c0   :  { %947 = vsyncpa [#allocation3], 1 }
 0x6c1   :  { %949 = vsyncpa [#allocation3 + $0x1], 1 }
 0x6c2   :  { %950 = vsyncpa [#allocation4], 1 }
 0x6c3   :  { %952 = vsyncpa [#allocation4 + $0x1], 1 }

</bundles_post_ra>
